<compile_context>
chip_gen: v5e
topology: v5e:2x2
jax: 0.10.0
libtpu: 0.0.40
codegen_flags: <defaults>
</compile_context>

<pallas_src>
import functools

import jax
import jax.numpy as jnp
from jax import lax
from jax.experimental import pallas as pl
from jax.experimental.pallas import tpu as pltpu


# ----------------------------- Pallas kernel --------------------------------


def temporal_block_kernel(x_ref, w1_ref, b1_ref, w2_ref, b2_ref, *rest,
                          k, dilation, tl, pad, use_downsample):
    """One TemporalBlock, one batch element, one time tile.

    x_ref  : (1, C_in, Lp + 2*pad)   zero-left-padded input (full time axis)
    w1_ref : (C_out, k*C_in)         tap-flattened (weight-normed) conv1 weight
    b1_ref : (C_out, 1)              f32
    w2_ref : (C_out, k*C_out)        tap-flattened (weight-normed) conv2 weight
    b2_ref : (C_out, 1)              f32
    rest   : (wd_ref(C_out, C_in), bd_ref(C_out, 1), o_ref, h1_ref) if
             use_downsample else (o_ref, h1_ref)
    o_ref  : (1, C_out, tl)
    h1_ref : (C_out, tl + pad)       VMEM scratch for the conv1 activations
    """
    if use_downsample:
        wd_ref, bd_ref, o_ref, h1_ref = rest
    else:
        o_ref, h1_ref = rest

    # Output tile covers original time positions [t0, t0 + tl).
    t0 = pl.multiple_of(pl.program_id(1) * tl, 128)
    win = tl + 2 * pad
    # Haloed window: x_pad[t0 : t0 + tl + 2*pad]  (x_pad[tau] = x[tau - 2*pad]).
    xw = x_ref[0, :, pl.ds(t0, win)]                               # (C_in, win)

    # ---- conv1 (causal, dilated) fused over taps ---------------------------
    # h1 is needed on positions [t0 - pad, t0 + tl) for conv2's halo.
    x_stack = jnp.concatenate(
        [xw[:, j * dilation: j * dilation + tl + pad] for j in range(k)],
        axis=0)                                                    # (k*C_in, tl+pad)
    h1 = jnp.dot(w1_ref[...], x_stack,
                 preferred_element_type=jnp.float32) + b1_ref[...]
    h1_ref[...] = jnp.maximum(h1, 0.0).astype(h1_ref.dtype)
    # (dropout1 is identity in eval mode)

    if pad > 0:
        # conv2's causal padding zeroes h1 at global positions < 0; only tiles
        # overlapping global position 0 need the mask (gated -> no per-tile
        # iota/compare/select on the steady-state tiles).
        @pl.when(t0 < pad)
        def _():
            u = lax.broadcasted_iota(jnp.int32, (1, tl + pad), 1)
            h1_ref[...] = jnp.where(u + t0 >= pad, h1_ref[...],
                                    jnp.zeros((), h1_ref.dtype))

    # ---- conv2 (causal, dilated) fused over taps ---------------------------
    h_stack = jnp.concatenate(
        [h1_ref[:, j * dilation: j * dilation + tl] for j in range(k)],
        axis=0)                                                    # (k*C_out, tl)
    h2 = jnp.dot(w2_ref[...], h_stack,
                 preferred_element_type=jnp.float32) + b2_ref[...]
    h2 = jnp.maximum(h2, 0.0)
    # (dropout2 is identity in eval mode)

    # ---- residual + final relu ---------------------------------------------
    res_in = xw[:, 2 * pad: 2 * pad + tl]                          # x[t0 : t0+tl]
    if use_downsample:
        res = jnp.dot(wd_ref[...], res_in,
                      preferred_element_type=jnp.float32) + bd_ref[...]
    else:
        res = res_in.astype(jnp.float32)

    o_ref[0] = jnp.maximum(h2 + res, 0.0).astype(o_ref.dtype)


# ------------------------------ JAX wrapper ----------------------------------


def _round_up(x, m):
    return ((x + m - 1) // m) * m


@functools.lru_cache(maxsize=1)
def _vmem_capacity_bytes():
    try:
        return int(pltpu.get_tpu_info().vmem_capacity_bytes)
    except Exception:
        return 64 * (1 << 20)          # conservative (v7x per-core VMEM)


def temporal_block_pallas(x, p, *, kernel_size, dilation,
                          compute_dtype=None, tl_max=None):
    """One TemporalBlock. Returns (B, C_out, Lp) with Lp = round_up(L, TL).

    Tail columns [L, Lp) are finite garbage that, by causality, never leaks
    into columns < L of later layers; the net-level wrapper slices them off.
    """
    B, C_in, L = x.shape
    C_out = p["w1"].shape[0]
    k = kernel_size
    pad = (k - 1) * dilation
    halo = 2 * pad                      # conv1 halo (pad) + conv2 halo (pad)
    use_ds = p["wd"] is not None
    cdt = jnp.dtype(x.dtype if compute_dtype is None else compute_dtype)

    vmem_cap = _vmem_capacity_bytes()
    if tl_max is None:
        # Bigger tiles amortize per-grid-step overhead and halo recompute;
        # keep smaller on 64 MiB-VMEM parts (v7x).
        tl_max = 4096 if vmem_cap >= (100 << 20) else 2048

    # Lane-dense time tiling: TL multiple of 128 (unmasked vst), Lp mult of TL.
    TL = min(tl_max, _round_up(L, 128))
    Lp = _round_up(L, TL)
    n_t = Lp // TL

    # Zero left-pad by the halo (causal padding for both convs), right-pad to Lp.
    x_pad = jnp.pad(x.astype(cdt), ((0, 0), (0, 0), (halo, Lp - L)))

    # Tap-flattened (weight-normed) weights: W_flat[o, j*C + i] = W[o, i, j].
    w1f = jnp.transpose(p["w1"], (0, 2, 1)).reshape(C_out, k * C_in).astype(cdt)
    w2f = jnp.transpose(p["w2"], (0, 2, 1)).reshape(C_out, k * C_out).astype(cdt)
    b1 = p["b1"].reshape(C_out, 1).astype(jnp.float32)
    b2 = p["b2"].reshape(C_out, 1).astype(jnp.float32)

    # ---- VMEM budget + cost estimate ----------------------------------------
    isz = cdt.itemsize
    in_buf = C_in * (Lp + halo) * isz                      # one input buffer
    out_buf = C_out * TL * isz
    w_bytes = (k * C_in * C_out + k * C_out * C_out
               + (C_in * C_out if use_ds else 0)) * isz + 3 * C_out * 4
    scratch_b = C_out * (TL + pad) * isz
    tmp_b = ((k * C_in + k * C_out) * (TL + pad) * isz     # tap stacks
             + 4 * C_out * (TL + pad) * 4)                 # f32 h1/h2/res/out
    # Single-buffer the full-sequence-resident input when it is big: its block
    # index only changes once per batch element, so the one exposed DMA is
    # amortized over n_t time tiles, and its VMEM footprint is halved.
    single_buffer_x = (2 * in_buf > (4 << 20)) and hasattr(pl, "Buffered")
    x_bufs = 1 if single_buffer_x else 2
    vmem_need = (x_bufs * in_buf + 2 * out_buf + 2 * w_bytes
                 + scratch_b + tmp_b + (8 << 20))
    vmem_limit = int(min(max(vmem_need, 32 << 20), int(0.9 * vmem_cap)))

    flops = 2 * B * Lp * (C_out * k * C_in + C_out * k * C_out
                          + (C_out * C_in if use_ds else 0))
    bytes_accessed = int(x_pad.size * isz + B * C_out * Lp * isz
                         + (k * C_in * C_out + k * C_out * C_out
                            + (C_in * C_out if use_ds else 0)) * isz)
    cost = pl.CostEstimate(flops=flops, transcendentals=0,
                           bytes_accessed=bytes_accessed)

    const = lambda b, t: (0, 0)
    kern = functools.partial(temporal_block_kernel, k=k, dilation=dilation,
                             tl=TL, pad=pad, use_downsample=use_ds)

    args = [x_pad, w1f, b1, w2f, b2]
    extra_specs = []
    if use_ds:
        extra_specs = [pl.BlockSpec((C_out, C_in), const),
                       pl.BlockSpec((C_out, 1), const)]
        args += [p["wd"].reshape(C_out, C_in).astype(cdt),
                 p["bd"].reshape(C_out, 1).astype(jnp.float32)]

    def call(single_buf):
        x_kwargs = {"pipeline_mode": pl.Buffered(1)} if single_buf else {}
        in_specs = [
            # Full padded time axis per batch element; same block index for
            # every time tile -> fetched once per batch element.
            pl.BlockSpec((1, C_in, Lp + halo), lambda b, t: (b, 0, 0),
                         **x_kwargs),
            pl.BlockSpec((C_out, k * C_in), const),
            pl.BlockSpec((C_out, 1), const),
            pl.BlockSpec((C_out, k * C_out), const),
            pl.BlockSpec((C_out, 1), const),
        ] + extra_specs
        return pl.pallas_call(
            kern,
            out_shape=jax.ShapeDtypeStruct((B, C_out, Lp), cdt),
            grid=(B, n_t),
            in_specs=in_specs,
            out_specs=pl.BlockSpec((1, C_out, TL), lambda b, t: (b, 0, t)),
            scratch_shapes=[pltpu.VMEM((C_out, TL + pad), cdt)],
            compiler_params=pltpu.CompilerParams(
                # Time tiles are fully independent (no accumulator across t),
                # so both axes are parallel (lets v7x's 2 TCs split either).
                dimension_semantics=("parallel", "parallel"),
                vmem_limit_bytes=vmem_limit),
            cost_estimate=cost,
        )(*args)

    if single_buffer_x:
        try:
            return call(True)
        except Exception:
            pass   # pipeline_mode=Buffered(1) unsupported -> default buffering
    return call(False)


def tcn_forward_pallas(x, params, *, kernel_size,
                       compute_dtype=jnp.bfloat16, tl_max=None):
    B, _, L = x.shape
    out_dtype = x.dtype
    h = x.astype(compute_dtype)
    for i, p in enumerate(params):
        h = temporal_block_pallas(h, p, kernel_size=kernel_size,
                                  dilation=2 ** i,
                                  compute_dtype=compute_dtype, tl_max=tl_max)
    # Drop the lane-dense padding tail (causality keeps columns < L exact).
    return h[:, :, :L].astype(out_dtype)


# --------------------------- parameter construction --------------------------


def _weight_norm_effective(v, g):
    # PyTorch weight_norm default dim=0: per-output-channel norm over (in, k).
    norm = jnp.sqrt(jnp.sum(v * v, axis=(1, 2), keepdims=True))
    return g.reshape(-1, 1, 1) * v / norm


def init_tcn_params(key, num_inputs, num_channels, kernel_size):
    params = []
    for i, c_out in enumerate(num_channels):
        c_in = num_inputs if i == 0 else num_channels[i - 1]
        key, k1, k2, k3, k4, k5, k6, k7 = jax.random.split(key, 8)
        v1 = 0.01 * jax.random.normal(k1, (c_out, c_in, kernel_size), jnp.float32)
        g1 = 0.5 + jax.random.uniform(k2, (c_out,), jnp.float32)
        v2 = 0.01 * jax.random.normal(k3, (c_out, c_out, kernel_size), jnp.float32)
        g2 = 0.5 + jax.random.uniform(k4, (c_out,), jnp.float32)
        p = {
            "w1": _weight_norm_effective(v1, g1),
            "b1": 0.1 * jax.random.normal(k5, (c_out,), jnp.float32),
            "w2": _weight_norm_effective(v2, g2),
            "b2": 0.1 * jax.random.normal(k6, (c_out,), jnp.float32),
        }
        if c_in != c_out:
            kd1, kd2 = jax.random.split(k7)
            p["wd"] = 0.01 * jax.random.normal(kd1, (c_out, c_in, 1), jnp.float32)
            p["bd"] = 0.1 * jax.random.normal(kd2, (c_out,), jnp.float32)
        else:
            p["wd"] = None
            p["bd"] = None
        params.append(p)
    return params


# ------------------------------ pure-JAX reference ---------------------------


def tcn_forward_ref(x, params, *, kernel_size):
    h = x
    for i, p in enumerate(params):
        dilation = 2 ** i
        pad = (kernel_size - 1) * dilation

        def conv(inp, w, b):
            y = lax.conv_general_dilated(
                inp, w, window_strides=(1,), padding=[(pad, 0)],
                rhs_dilation=(dilation,),
                dimension_numbers=("NCH", "OIH", "NCH"))
            return y + b.reshape(1, -1, 1)

        h1 = jax.nn.relu(conv(h, p["w1"], p["b1"]))
        h2 = jax.nn.relu(conv(h1, p["w2"], p["b2"]))
        if p["wd"] is None:
            res = h
        else:
            res = (jnp.einsum("ocx,bcl->bol", p["wd"], h)
                   + p["bd"].reshape(1, -1, 1))
        h = jax.nn.relu(h2 + res)
    return h


# ----------------------------------- main ------------------------------------

if __name__ == "__main__":
    key = jax.random.PRNGKey(0)
    key, kx1, kp1, kx2, kp2 = jax.random.split(key, 5)

    # --- test 1: original small shapes (single time tile, k=2) ---------------
    B, num_inputs, L = 2, 4, 16
    num_channels = [8, 8]
    kernel_size = 2
    # dropout=0.2 in the module; inference/eval -> identity in this kernel.
    x = jax.random.normal(kx1, (B, num_inputs, L), jnp.float32)
    params = init_tcn_params(kp1, num_inputs, num_channels, kernel_size)
    ref = tcn_forward_ref(x, params, kernel_size=kernel_size)

    out_f32 = jax.block_until_ready(
        tcn_forward_pallas(x, params, kernel_size=kernel_size,
                           compute_dtype=jnp.float32))
    assert out_f32.shape == (B, num_channels[-1], L)
    assert jnp.allclose(out_f32, ref, atol=1e-5, rtol=1e-4), (
        float(jnp.max(jnp.abs(out_f32 - ref))))

    out_bf16 = jax.block_until_ready(
        tcn_forward_pallas(x, params, kernel_size=kernel_size,
                           compute_dtype=jnp.bfloat16))
    assert jnp.allclose(out_bf16, ref, atol=1e-1, rtol=1e-1), (
        float(jnp.max(jnp.abs(out_bf16 - ref))))

    # --- test 2: multi-time-tile path (L > TL), k=3, three dilations ---------
    B2, ni2, L2 = 2, 4, 200
    ch2 = [8, 8, 16]
    ks2 = 3
    x2 = jax.random.normal(kx2, (B2, ni2, L2), jnp.float32)
    params2 = init_tcn_params(kp2, ni2, ch2, ks2)
    ref2 = tcn_forward_ref(x2, params2, kernel_size=ks2)

    out2_f32 = jax.block_until_ready(
        tcn_forward_pallas(x2, params2, kernel_size=ks2,
                           compute_dtype=jnp.float32, tl_max=128))
    assert out2_f32.shape == (B2, ch2[-1], L2)
    assert jnp.allclose(out2_f32, ref2, atol=5e-5, rtol=5e-4), (
        float(jnp.max(jnp.abs(out2_f32 - ref2))))

    out2_bf16 = jax.block_until_ready(
        tcn_forward_pallas(x2, params2, kernel_size=ks2,
                           compute_dtype=jnp.bfloat16, tl_max=128))
    assert jnp.allclose(out2_bf16, ref2, atol=1e-1, rtol=1e-1), (
        float(jnp.max(jnp.abs(out2_bf16 - ref2))))

    print("KERNEL_OK")
</pallas_src>

<mosaic_0001>
module attributes {stable_mosaic.version = 11 : i64} {
  func.func @temporal_block_kernel(%arg0: i32, %arg1: i32, %arg2: memref<1x4x130xf32, #tpu.memory_space<vmem>>, %arg3: memref<8x8xf32, #tpu.memory_space<vmem>>, %arg4: memref<8x1xf32, #tpu.memory_space<vmem>>, %arg5: memref<8x16xf32, #tpu.memory_space<vmem>>, %arg6: memref<8x1xf32, #tpu.memory_space<vmem>>, %arg7: memref<8x4xf32, #tpu.memory_space<vmem>>, %arg8: memref<8x1xf32, #tpu.memory_space<vmem>>, %arg9: memref<1x8x128xf32, #tpu.memory_space<vmem>>, %arg10: memref<8x129xf32, #tpu.memory_space<vmem>>) attributes {dimension_semantics = [#tpu.dimension_semantics<parallel>, #tpu.dimension_semantics<parallel>], iteration_bounds = array<i64: 2, 1>, scalar_prefetch = 0 : i64, scratch_operands = 1 : i64, tpu.core_type = #tpu.core_type<tc>, window_params = [{transform_indices = @transform_0, window_bounds = array<i64: 1, 4, 130>}, {pipeline_mode = #tpu.pipeline_mode<synchronous>, transform_indices = @transform_1, window_bounds = array<i64: 8, 8>}, {pipeline_mode = #tpu.pipeline_mode<synchronous>, transform_indices = @transform_2, window_bounds = array<i64: 8, 1>}, {pipeline_mode = #tpu.pipeline_mode<synchronous>, transform_indices = @transform_3, window_bounds = array<i64: 8, 16>}, {pipeline_mode = #tpu.pipeline_mode<synchronous>, transform_indices = @transform_4, window_bounds = array<i64: 8, 1>}, {pipeline_mode = #tpu.pipeline_mode<synchronous>, transform_indices = @transform_5, window_bounds = array<i64: 8, 4>}, {pipeline_mode = #tpu.pipeline_mode<synchronous>, transform_indices = @transform_6, window_bounds = array<i64: 8, 1>}, {transform_indices = @transform_7, window_bounds = array<i64: 1, 8, 128>}]} {
    %c128_i32 = arith.constant 128 : i32
    %0 = arith.muli %arg1, %c128_i32 : i32
    %1 = tpu.assume_multiple %0, 128 : i32
    %c0 = arith.constant 0 : index
    %c0_0 = arith.constant 0 : index
    %2 = arith.index_cast %1 : i32 to index
    %3 = vector.load %arg2[%c0, %c0_0, %2] : memref<1x4x130xf32, #tpu.memory_space<vmem>>, vector<1x4x130xf32>
    %4 = vector.shape_cast %3 : vector<1x4x130xf32> to vector<4x130xf32>
    %5 = vector.extract_strided_slice %4 {offsets = [0, 0], sizes = [4, 129], strides = [1, 1]} : vector<4x130xf32> to vector<4x129xf32>
    %6 = vector.extract_strided_slice %4 {offsets = [0, 1], sizes = [4, 129], strides = [1, 1]} : vector<4x130xf32> to vector<4x129xf32>
    %7 = tpu.concatenate %5, %6 in 0 : vector<4x129xf32>, vector<4x129xf32> -> vector<8x129xf32>
    %c0_1 = arith.constant 0 : index
    %c0_2 = arith.constant 0 : index
    %8 = vector.load %arg3[%c0_1, %c0_2] : memref<8x8xf32, #tpu.memory_space<vmem>>, vector<8x8xf32>
    %cst = arith.constant dense<0.000000e+00> : vector<8x129xf32>
    %9 = tpu.matmul %8, %7, %cst {dimension_numbers = #tpu.dot_dimension_numbers<[1], [0], [0], [1], [0, 0, 1, 1], [], []>} : vector<8x8xf32>, vector<8x129xf32>, vector<8x129xf32> -> vector<8x129xf32>
    %c0_3 = arith.constant 0 : index
    %c0_4 = arith.constant 0 : index
    %10 = vector.load %arg4[%c0_3, %c0_4] : memref<8x1xf32, #tpu.memory_space<vmem>>, vector<8x1xf32>
    %11 = vector.broadcast %10 : vector<8x1xf32> to vector<8x129xf32>
    %12 = arith.addf %9, %11 : vector<8x129xf32>
    %cst_5 = arith.constant 0.000000e+00 : f32
    %13 = vector.broadcast %cst_5 : f32 to vector<8x129xf32>
    %14 = arith.maximumf %12, %13 : vector<8x129xf32>
    %c0_6 = arith.constant 0 : index
    %c0_7 = arith.constant 0 : index
    %15 = vector.load %arg10[%c0_6, %c0_7] : memref<8x129xf32, #tpu.memory_space<vmem>>, vector<8x129xf32>
    tpu.vector_store %arg10[%c0_6, %c0_7], %14 {strides = array<i32>} : memref<8x129xf32, #tpu.memory_space<vmem>>, vector<8x129xf32>,
    %c1_i32 = arith.constant 1 : i32
    %16 = arith.cmpi slt, %1, %c1_i32 : i32
    %17 = arith.extui %16 : i1 to i32
    %c0_i32 = arith.constant 0 : i32
    %18 = arith.cmpi ne, %17, %c0_i32 : i32
    scf.if %18 {
      %41 = tpu.iota {dimensions = array<i32: 1>} : vector<1x129xi32>
      %42 = vector.broadcast %1 : i32 to vector<1x129xi32>
      %43 = arith.addi %41, %42 : vector<1x129xi32>
      %c1_i32_26 = arith.constant 1 : i32
      %44 = vector.broadcast %c1_i32_26 : i32 to vector<1x129xi32>
      %45 = arith.cmpi sge, %43, %44 : vector<1x129xi32>
      %c0_27 = arith.constant 0 : index
      %c0_28 = arith.constant 0 : index
      %46 = vector.load %arg10[%c0_27, %c0_28] : memref<8x129xf32, #tpu.memory_space<vmem>>, vector<8x129xf32>
      %cst_29 = arith.constant 0.000000e+00 : f32
      %47 = vector.shape_cast %45 : vector<1x129xi1> to vector<1x129xi1>
      %48 = vector.broadcast %47 : vector<1x129xi1> to vector<8x129xi1>
      %49 = vector.broadcast %cst_29 : f32 to vector<8x129xf32>
      %50 = arith.select %48, %46, %49 : vector<8x129xi1>, vector<8x129xf32>
      %c0_30 = arith.constant 0 : index
      %c0_31 = arith.constant 0 : index
      %51 = vector.load %arg10[%c0_30, %c0_31] : memref<8x129xf32, #tpu.memory_space<vmem>>, vector<8x129xf32>
      tpu.vector_store %arg10[%c0_30, %c0_31], %50 {strides = array<i32>} : memref<8x129xf32, #tpu.memory_space<vmem>>, vector<8x129xf32>,
    } else {
    }
    %c0_8 = arith.constant 0 : index
    %c0_9 = arith.constant 0 : index
    %19 = vector.load %arg10[%c0_8, %c0_9] : memref<8x129xf32, #tpu.memory_space<vmem>>, vector<8x128xf32>
    %c0_10 = arith.constant 0 : index
    %c1 = arith.constant 1 : index
    %20 = vector.load %arg10[%c0_10, %c1] : memref<8x129xf32, #tpu.memory_space<vmem>>, vector<8x128xf32>
    %21 = tpu.concatenate %19, %20 in 0 : vector<8x128xf32>, vector<8x128xf32> -> vector<16x128xf32>
    %c0_11 = arith.constant 0 : index
    %c0_12 = arith.constant 0 : index
    %22 = vector.load %arg5[%c0_11, %c0_12] : memref<8x16xf32, #tpu.memory_space<vmem>>, vector<8x16xf32>
    %cst_13 = arith.constant dense<0.000000e+00> : vector<8x128xf32>
    %23 = tpu.matmul %22, %21, %cst_13 {dimension_numbers = #tpu.dot_dimension_numbers<[1], [0], [0], [1], [0, 0, 1, 1], [], []>} : vector<8x16xf32>, vector<16x128xf32>, vector<8x128xf32> -> vector<8x128xf32>
    %c0_14 = arith.constant 0 : index
    %c0_15 = arith.constant 0 : index
    %24 = vector.load %arg6[%c0_14, %c0_15] : memref<8x1xf32, #tpu.memory_space<vmem>>, vector<8x1xf32>
    %25 = vector.broadcast %24 : vector<8x1xf32> to vector<8x128xf32>
    %26 = arith.addf %23, %25 : vector<8x128xf32>
    %cst_16 = arith.constant 0.000000e+00 : f32
    %27 = vector.broadcast %cst_16 : f32 to vector<8x128xf32>
    %28 = arith.maximumf %26, %27 : vector<8x128xf32>
    %29 = vector.extract_strided_slice %4 {offsets = [0, 2], sizes = [4, 128], strides = [1, 1]} : vector<4x130xf32> to vector<4x128xf32>
    %c0_17 = arith.constant 0 : index
    %c0_18 = arith.constant 0 : index
    %30 = vector.load %arg7[%c0_17, %c0_18] : memref<8x4xf32, #tpu.memory_space<vmem>>, vector<8x4xf32>
    %cst_19 = arith.constant dense<0.000000e+00> : vector<8x128xf32>
    %31 = tpu.matmul %30, %29, %cst_19 {dimension_numbers = #tpu.dot_dimension_numbers<[1], [0], [0], [1], [0, 0, 1, 1], [], []>} : vector<8x4xf32>, vector<4x128xf32>, vector<8x128xf32> -> vector<8x128xf32>
    %c0_20 = arith.constant 0 : index
    %c0_21 = arith.constant 0 : index
    %32 = vector.load %arg8[%c0_20, %c0_21] : memref<8x1xf32, #tpu.memory_space<vmem>>, vector<8x1xf32>
    %33 = vector.broadcast %32 : vector<8x1xf32> to vector<8x128xf32>
    %34 = arith.addf %31, %33 : vector<8x128xf32>
    %35 = arith.addf %28, %34 : vector<8x128xf32>
    %cst_22 = arith.constant 0.000000e+00 : f32
    %36 = vector.broadcast %cst_22 : f32 to vector<8x128xf32>
    %37 = arith.maximumf %35, %36 : vector<8x128xf32>
    %c0_23 = arith.constant 0 : index
    %c0_24 = arith.constant 0 : index
    %c0_25 = arith.constant 0 : index
    %38 = vector.load %arg9[%c0_23, %c0_24, %c0_25] : memref<1x8x128xf32, #tpu.memory_space<vmem>>, vector<1x8x128xf32>
    %39 = vector.shape_cast %38 : vector<1x8x128xf32> to vector<8x128xf32>
    %40 = vector.shape_cast %37 : vector<8x128xf32> to vector<1x8x128xf32>
    tpu.vector_store %arg9[%c0_23, %c0_24, %c0_25], %40 {strides = array<i32>} : memref<1x8x128xf32, #tpu.memory_space<vmem>>, vector<1x8x128xf32>,
    return
  }
  func.func @transform_0(%arg0: i32, %arg1: i32) -> (i32, i32, i32) {
    %c0_i32 = arith.constant 0 : i32
    %c0_i32_0 = arith.constant 0 : i32
    %c0_i32_1 = arith.constant 0 : i32
    return %arg0, %c0_i32, %c0_i32_0 : i32, i32, i32
  }
  func.func @transform_1(%arg0: i32, %arg1: i32) -> (i32, i32) {
    %c0_i32 = arith.constant 0 : i32
    %c0_i32_0 = arith.constant 0 : i32
    %c0_i32_1 = arith.constant 0 : i32
    return %c0_i32, %c0_i32_0 : i32, i32
  }
  func.func @transform_2(%arg0: i32, %arg1: i32) -> (i32, i32) {
    %c0_i32 = arith.constant 0 : i32
    %c0_i32_0 = arith.constant 0 : i32
    %c0_i32_1 = arith.constant 0 : i32
    return %c0_i32, %c0_i32_0 : i32, i32
  }
  func.func @transform_3(%arg0: i32, %arg1: i32) -> (i32, i32) {
    %c0_i32 = arith.constant 0 : i32
    %c0_i32_0 = arith.constant 0 : i32
    %c0_i32_1 = arith.constant 0 : i32
    return %c0_i32, %c0_i32_0 : i32, i32
  }
  func.func @transform_4(%arg0: i32, %arg1: i32) -> (i32, i32) {
    %c0_i32 = arith.constant 0 : i32
    %c0_i32_0 = arith.constant 0 : i32
    %c0_i32_1 = arith.constant 0 : i32
    return %c0_i32, %c0_i32_0 : i32, i32
  }
  func.func @transform_5(%arg0: i32, %arg1: i32) -> (i32, i32) {
    %c0_i32 = arith.constant 0 : i32
    %c0_i32_0 = arith.constant 0 : i32
    %c0_i32_1 = arith.constant 0 : i32
    return %c0_i32, %c0_i32_0 : i32, i32
  }
  func.func @transform_6(%arg0: i32, %arg1: i32) -> (i32, i32) {
    %c0_i32 = arith.constant 0 : i32
    %c0_i32_0 = arith.constant 0 : i32
    %c0_i32_1 = arith.constant 0 : i32
    return %c0_i32, %c0_i32_0 : i32, i32
  }
  func.func @transform_7(%arg0: i32, %arg1: i32) -> (i32, i32, i32) {
    %c0_i32 = arith.constant 0 : i32
    %c0_i32_0 = arith.constant 0 : i32
    return %arg0, %c0_i32, %arg1 : i32, i32, i32
  }
}

</mosaic_0001>

<bundles_post_ra>
// kernel: tpu_custom_call.1
= control target key start
LH: loop header
LB: loop body
LE: loop exit
PB: predicated region body
PF: predicated region fallthrough
CT: control target
= control target key end

     0   :  { %12 = vsyncpa [#allocation4], 0  ;;  %s907_s0 = inlined_call_operand.vmem [shape: f32[2,4,130], index: 0, kind: input, shape index: {}]   ;;  %s908_s1 = inlined_call_operand.vmem [shape: f32[8,8], index: 1, kind: input, shape index: {}]   ;;  %s909_s2 = inlined_call_operand.vmem [shape: f32[8,1], index: 2, kind: input, shape index: {}]   ;;  %s910_s3 = inlined_call_operand.vmem [shape: f32[8,16], index: 3, kind: input, shape index: {}]   ;;  %s911_s4 = inlined_call_operand.vmem [shape: f32[8,1], index: 4, kind: input, shape index: {}]   ;;  %s912_s5 = inlined_call_operand.vmem [shape: f32[8,4], index: 5, kind: input, shape index: {}]   ;;  %s913_s6 = inlined_call_operand.vmem [shape: f32[8,1], index: 6, kind: input, shape index: {}]   ;;  %s914_s7 = inlined_call_operand.hbm [shape: f32[2,8,128], index: 7, kind: output, shape index: {}]  }
   0x1   :  { %14 = vsyncpa [#allocation4 + $0x1], 0  ;;  %s783_s24 = smov 0   ;;  %s785_s25 = smov 0  }
   0x2   :  { %s787_s26 = smov 0   ;;  %s789_s27 = smov 0  }
   0x3   :  { %s791_s28 = smov 0   ;;  %s793_s29 = smov 0  }
   0x4 LB: > { %s570_s30 = sadd.s32 4294967295, %s738_s29   ;;  %s571_s8 = sadd.s32 4294967294, %s738_s29   ;;  %s738_s29 = sphi %s793_s29, %s20_s29   ;;  %s734_s28 = sphi %s791_s28, %s921_s28   ;;  %s730_s27 = sphi %s789_s27, %s920_s27   ;;  %s726_s26 = sphi %s787_s26, %s919_s26   ;;  %s722_s25 = sphi %s785_s25, %s918_s25   ;;  %s718_s24 = sphi %s783_s24, %s917_s24  }
   0x5   : > { %s32_s9 = sadd.s32 1, %s734_s28  ;;  %s193_s10 = sadd.s32 1, %s726_s26 }
   0x6   : > { %p34_p0 = scmp.ge.s32.totalorder %s32_s9, 2  ;;  %p203_p1 = scmp.ne.s32.totalorder %s726_s26, %s722_s25 }
   0x7   : > { %p204_p2 = scmp.eq.s32.totalorder %s570_s30, 1  ;;  %p209_p3 = scmp.ne.s32.totalorder %s722_s25, %s718_s24 }
   0x8   : > { %s923_s9 = smov (%p34_p0, %s32_s9), 0  ;;  %p210_p5 = scmp.eq.s32.totalorder %s571_s8, 1 }
   0x9   : > { %p823_p4 = por %p204_p2, %p203_p1  ;;  %s188_s12 = ssub.s32 %s734_s28, %s923_s9 }
   0xa   : > { %p574_p6 = scmp.ge.s32.totalorder %s738_s29, 1  ;;  %p191_p7 = scmp.eq.s32.totalorder %s188_s12, 0 }
   0xb   : > { %p830_p8 = por %p210_p5, %p209_p3  ;;  %p254_p9 = scmp.lt.s32.totalorder %s738_s29, 3 }
   0xc   : > { %s836_s14 = scalar_select %p191_p7, %s726_s26, %s193_s10  }
   0xd   : > { %p255_p10 = pnand %p574_p6, %p254_p9 }
   0xe   : > { %p286_p11 = scmp.lt.s32.totalorder (!%p255_p10), %s730_s27, 1  ;;  %s740_s20 = smov (!%p255_p10), 127  }
   0xf   : > { %258 = sbr.rel (%p255_p10) target bundleno = 576 (0x240), region = 48  ;;  %s742_s8 = smov (!%p255_p10), 126  }
  0x10   : > { %s283_s21 = sand.u32 (!%p255_p10), 1, %s722_s25   ;;  %s584_s23 = sshll.u32 (!%p255_p10), %s730_s27, 3 }
  0x11   : > { %s575_s22 = sshll.u32 (!%p255_p10), %s283_s21, 3  ;;  %s495_s10 = scalar_lea.hbm (!%p255_p10), %s914_s7, %s584_s23 }
  0x12   : > { %s285_s12 = scalar_lea.vmem (!%p255_p10), [#allocation3], %s575_s22  ;;  %s484_s17 = scalar_lea.sflag (!%p255_p10), [#allocation4], %s283_s21 }
  0x13   : > { %s680_s23 = scalar_lea.hbm (!%p255_p10), %s914_s7, 16 }
  0x14   : > { %s287_s15 = scalar_select %p286_p11, %s730_s27, 1  ;;  %v319_v6 = vld [vmem:[%s909_s2] sm:$0xff]  ;;  %v741_v7 = vmov 0   ;;  %vm315_vm0 = vcmask 1043456   ;;  %vm311_vm1 = vcmask 1039360   ;;  %vm325_vm2 = vcmask 64512  }
  0x15   : > { %651 = vset.pattern.permute.xlu0 %v741_v7  ;;  %658 = vset.pattern.permute.xlu1 %v741_v7  ;;  %v318_v11 = vld [vmem:[%s908_s1] sm:$0xff]  ;;  %v378_v15 = vlaneseq  ;;  %vm372_vm3 = vcmask 7168   ;;  %vm413_vm5 = vcmask 130048   ;;  %vm452_vm6 = vcmask 1031168  }
  0x16   : > { %s587_s16 = sshll.u32 %s287_s15, 3  ;;  %657 = vset.pattern.permute.xlu2 %v741_v7  ;;  %v439_v30 = vld [vmem:[%s913_s6] sm:$0xff]  ;;  %vm454_vm7 = vcmask 31744   ;;  %s497_s15 = sshll.u32 %s285_s12, 4  ;;  %s498_s15 = int_to_ptr.vmem [resolvable:$true] %s497_s15 }
  0x17   : > { %s290_s19 = scalar_lea.vmem %s907_s0, %s587_s16  ;;  %v379_v17 = vand.u32 127, %v378_v15  ;;  %v407_v31 = vld [vmem:[%s911_s4] sm:$0xff]  ;;  %s499_s16 = sshll.u32 %s495_s10, 4  ;;  %s500_s16 = int_to_ptr.hbm [resolvable:$true] %s499_s16 }
  0x18   : > { %v296_v0 = vld [vmem:[%s290_s19] sm:$0xff]  ;;  %s674_s27 = sshra.s32 %s500_s16, 4  ;;  %s675_s27 = int_to_ptr.hbm [resolvable:$true] %s674_s27 }
  0x19   : > { %298 = vst [vmem:[#allocation1] ss:$2 sm:$0xff] %v296_v0  ;;  %vm384_vm4 = vcmp.ge.s32.totalorder %v379_v17, 1  ;;  %v406_v36 = vld [vmem:[%s910_s3] sm:$0xff]  ;;  %s676_s18 = scalar_lea.hbm %s675_s27, 8  ;;  %p681_p1 = scmp.lt.s32.totalorder %s675_s27, %s914_s7 }
  0x1a   : > { %v438_v39 = vld [vmem:[%s912_s5] sm:$0xff]  ;;  %p677_p12 = scmp.ne.s32.totalorder %s675_s27, %s676_s18  ;;  %p682_p2 = scmp.lt.s32.totalorder %s680_s23, %s676_s18 }
  0x1c   : > { %p678_p13 = pnand %p677_p12, %p823_p4  ;;  %p683_p3 = por %p682_p2, %p681_p1 }
  0x1e   : > { %p679_p0 = pneg %p678_p13 }
  0x20   : > { %v299_v1 = vld.sshfl [vmem:[#allocation1] sm:$0xff pattern:$0x75316420]  ;;  %v300_v2 = vld.sshfl [vmem:[#allocation1 + $0x8] sm:$0xff pattern:$0x75316420]  ;;  %p684_p5 = pnand %p683_p3, %p679_p0 }
  0x21   : > { %304 = vst [vmem:[#allocation1 + $0x1] ss:$2 sm:$0xff] %v296_v0 }
  0x28   : > { %v305_v3 = vld.sshfl [vmem:[#allocation1] sm:$0xff pattern:$0x75316420]  ;;  %v306_v4 = vld.sshfl [vmem:[#allocation1 + $0x8] sm:$0xff pattern:$0x75316420] }
  0x29   : > { %v646_v5 = vpack.i.bf16 %v306_v4, %v305_v3  ;;  %445 = vst [vmem:[#allocation1] ss:$2 sm:$0xff] %v296_v0 }
  0x2b   : > { %647 = vrot.lane.b32.xlu0 %v646_v5, %s740_s20 }
  0x30   : > { %v447_v18 = vld.sshfl [vmem:[#allocation1 + $0x8] sm:$0xff pattern:$0x75316420]  ;;  %v446_v29 = vld.sshfl [vmem:[#allocation1] sm:$0xff pattern:$0x75316420] }
  0x31   : > { %450 = vrot.lane.b32.xlu2 %v447_v18, %s742_s8 }
  0x33   : > { %322 = vperm.xlu0 %651, %v319_v6  }
  0x39   : > { %410 = vperm.xlu2 %657, %v407_v31  }
  0x8b   : > { %v451_v37 = vpop.permute.xlu2 %450 }
  0x93   : > { %v411_v41 = vpop.permute.xlu2 %410 }
  0x9d   : > { %v648_v8 = vpop.permute.xlu0 %647 }
  0x9e   : > { %v650_v9 = vunpack.i.h.bf16 %v648_v8  ;;  %v649_v10 = vunpack.i.l.bf16 %v648_v8 }
  0xa0   : > { %v317_v12 = vsel %vm315_vm0, %v300_v2, %v650_v9  ;;  %v312_v13 = vsel %vm311_vm1, %v649_v10, %v650_v9 }
  0xa1   : > { %364 = vmatpush.msra.mxu1 %v317_v12  ;;  %v316_v14 = vsel %vm315_vm0, %v299_v1, %v312_v13 }
  0xa2   : > { %344 = vmatpush.msra.mxu0 %v316_v14  ;;  %579 = vmatmul.msk.f32.vlgmr.msra.gmra.mxu1 %vm325_vm2, %v318_v11 }
  0xa3   : > { %578 = vmatmul.msk.f32.vlgmr.msra.gmra.mxu0 %vm325_vm2, %v318_v11 }
  0xa5   : > { %v323_v16 = vpop.permute.xlu0 %322 }
 0x11f   : > { %v366_v19 = vpop.f32.mrf.mxu1 }
 0x120   : > { %v346_v20 = vpop.f32.mrf.mxu0  ;;  %v367_v21 = vadd.f32 %v366_v19, %v323_v16 }
 0x121   : > { %v347_v22 = vadd.f32 %v346_v20, %v323_v16 }
 0x122   : > { %v370_v23 = vmax.f32 %v367_v21, 0.0 }
 0x123   : > { %v369_v24 = vmax.f32 %v347_v22, 0.0 }
 0x124   : > { %373 = vst.msk [vmem:[#allocation2 + $0x8] sm:$0xff] %vm372_vm3, %v370_v23 }
 0x125   : > { %v392_v25 = vsel %vm384_vm4, %v369_v24, 0.0 }
 0x12b   : > { %v387_v26 = vld [vmem:[#allocation2 + $0x8] sm:$0xff] }
 0x12c   : > { %395 = vst.msk [vmem:[#allocation2 + $0x8] sm:$0xff] %vm372_vm3, %v387_v26 }
 0x133   : > { %v397_v27 = vld [vmem:[#allocation2 + $0x8] sm:$0xff] }
 0x134   : > { %v652_v28 = vpack.i.bf16 %v397_v27, %v392_v25 }
 0x136   : > { %653 = vrot.lane.b32.xlu1 %v652_v28, %s740_s20 }
 0x13e   : > { %448 = vrot.lane.b32.xlu1 %v446_v29, %s742_s8 }
 0x146   : > { %442 = vperm.xlu1 %658, %v439_v30  }
 0x1a8   : > { %v654_v32 = vpop.permute.xlu1 %653 }
 0x1a9   : > { %v656_v33 = vunpack.i.h.bf16 %v654_v32  ;;  %v655_v34 = vunpack.i.l.bf16 %v654_v32 }
 0x1ab   : > { %v404_v35 = vsel %vm311_vm1, %v655_v34, %v656_v33 }
 0x1ac   : > { %431 = vmatpush.msra.mxu2 %v404_v35 }
 0x1ae   : > { %659 = vmatpush.msk.msra.mxu2 %vm384_vm4, %v369_v24 }
 0x1af   : > { %580 = vmatmul.msk.f32.vlgmr.msra.gmra.mxu2 %vm413_vm5, %v406_v36 }
 0x1b0   : > { %v449_v38 = vpop.permute.xlu1 %448 }
 0x1b1   : > { %v453_v40 = vsel %vm452_vm6, %v449_v38, %v451_v37 }
 0x1b2   : > { %581 = vmatpush.msk.msra.mxu3 %vm315_vm0, %v453_v40 }
 0x1b3   : > { %582 = vmatmul.msk.f32.vlgmr.msra.gmra.mxu3 %vm454_vm7, %v438_v39 }
 0x1b8   : > { %v443_v44 = vpop.permute.xlu1 %442 }
 0x232   : > { %v434_v42 = vpop.f32.mrf.mxu2 }
 0x233   : > { %v435_v43 = vadd.f32 %v434_v42, %v411_v41 }
 0x235   : > { %v437_v45 = vmax.f32 %v435_v43, 0.0 }
 0x236   : > { %v477_v46 = vpop.f32.mrf.mxu3 }
 0x237   : > { %v478_v47 = vadd.f32 %v477_v46, %v443_v44 }
 0x239   : > { %v480_v48 = vadd.f32 %v478_v47, %v437_v45 }
 0x23b   : > { %v481_v49 = vmax.f32 %v480_v48, 0.0 }
 0x23d   : > { %482 = vst [vmem:[%s285_s12] sm:$0xff] %v481_v49 }
 0x23e   : > { %687 = shalt.err (!%p684_p5)
}
 0x23f   : > { %588 = dma.vmem_to_hbm [thread:$0]  (%p823_p4), %s498_s15, 128, %s500_s16, %s484_s17  }
 0x240 PF: > { %p594_p6 = scmp.ge.s32.totalorder %s738_s29, 2  ;;  %s511_s21 = sand.u32 1, %s718_s24  }
 0x241   : > { %s512_s8 = scalar_lea.sflag [#allocation4], %s511_s21 }
 0x242   : > { %p591_p7 = pnand %p594_p6, %p830_p8 }
 0x244   : > { %p592_p9 = pneg %p591_p7 }
 0x246   : > { %713 = dma.done.wait (%p592_p9), %s512_s8, 128  }
 0x247   : > { %715 = vsyncadd (%p592_p9), %s512_s8, 4294967168  ;;  %s20_s29 = sadd.s32 1, %s738_s29   ;;  %s917_s24 = smov %s722_s25 }
 0x248   : > { %p17_p10 = scmp.ge.s32.totalorder %s20_s29, 4   ;;  %s918_s25 = smov %s726_s26 }
 0x249   : > { %s919_s26 = smov %s836_s14  ;;  %s920_s27 = smov %s734_s28 }
 0x24a   : > { %s921_s28 = smov %s923_s9  ;;  %19 = sbr.rel (!%p17_p10) target bundleno = 4 (0x4), region = 89 }
 0x24f   :  { %518 = vsyncpa [#allocation4], 1 }
 0x250   :  { %520 = vsyncpa [#allocation4 + $0x1], 1 }

</bundles_post_ra>
